<compile_context>
chip_gen: v6e
topology: v6e:2x2x1
jax: 0.10.0
libtpu: 0.0.40
codegen_flags: <defaults>
</compile_context>

<pallas_src>
import jax
import jax.numpy as jnp
from jax.experimental import pallas as pl
from jax.experimental.pallas import tpu as pltpu

# ---------------- model hyper-parameters (small, consistent with module) ----
IN_CHANNELS = 4
OUT_CHANNELS = 4
HIDDEN = 8
LAYERS = 2
GROUPS = 2
BIAS = True
BATCH = 2
SEQ = 16

HG = HIDDEN * GROUPS            # hidden_channels * groups
OG = OUT_CHANNELS * GROUPS      # out_channels * groups
BN_EPS = 1e-5

NUM_W = 2 * LAYERS + 2               # start conv + 2*L residual convs + end conv
NUM_V = 3 * (2 * LAYERS + 1) + 1     # (bias, gamma, beta) per BN'd conv + end bias


# ---------------------------- Pallas kernel ---------------------------------
def predictor_kernel(x_ref, w_ref, v_ref, out_ref):
    # x_ref: (B, Cin, T) NCL input
    # w_ref: (NUM_W, HG, HG) stacked weights (PyTorch (Cout, Cin) layout,
    #        zero-padded where narrower)
    # v_ref: (HG, NUM_V) stacked per-channel column vectors
    # out_ref: (B, OG, T) NCL output
    B, Cin, T = x_ref.shape
    og = out_ref.shape[1]
    n = B * T
    eps = jnp.float32(BN_EPS)
    inv_n = jnp.float32(1.0 / n)

    # NCL -> lane-dense (Cin, B*T): append batch slices along the lane axis.
    x = jnp.concatenate([x_ref[b] for b in range(B)], axis=-1)      # (Cin, N)

    v = v_ref[...]                                                  # (HG, NUM_V)

    def col(i):                            # (HG, 1) per-channel column vector
        return v[:, i:i + 1]

    def bn_tanh(y, base):
        # training-mode BatchNorm1d over (N, L) == lane axis here.
        # Fused single-pass batch stats: mean and E[y^2], var = E[y^2]-mean^2.
        s1 = jnp.sum(y, axis=-1, keepdims=True)
        s2 = jnp.sum(y * y, axis=-1, keepdims=True)
        mean = s1 * inv_n
        var = s2 * inv_n - mean * mean                              # biased var
        return jnp.tanh((y - mean) * jax.lax.rsqrt(var + eps)
                        * col(base + 1) + col(base + 2))

    # start: Conv1d(Cin, HG, 1) -> BN -> Tanh
    w0 = w_ref[0][:, :Cin]                                          # (HG, Cin)
    h = jnp.dot(w0, x, preferred_element_type=jnp.float32) + col(0)
    h = bn_tanh(h, 0)

    # residual blocks: (grouped conv -> BN -> Tanh) x 2, + skip.
    # Grouped 1x1 convs are dense block-diagonal weights (same semantics).
    # TODO(synk): at production GROUPS/HIDDEN use a true per-group contraction
    # instead of block-diagonal densification (G x redundant MACs).
    for l in range(LAYERS):
        y = h
        for j in range(2):
            wi = 1 + 2 * l + j
            vi = 3 + 3 * (2 * l + j)
            y = jnp.dot(w_ref[wi], y,
                        preferred_element_type=jnp.float32) + col(vi)
            y = bn_tanh(y, vi)
        h = y + h

    # end: grouped Conv1d(HG, OG, 1)
    we = w_ref[NUM_W - 1][:og, :]                                   # (OG, HG)
    out = (jnp.dot(we, h, preferred_element_type=jnp.float32)
           + col(NUM_V - 1)[:og])                                   # (OG, N)

    # lane-dense (OG, B*T) -> NCL output (B, OG, T)
    for b in range(B):
        out_ref[b] = out[:, b * T:(b + 1) * T]


def _vmem_spec():
    return pl.BlockSpec(memory_space=pltpu.MemorySpace.VMEM)


@jax.jit
def predictor_forward(x_ncl, wstack, vstack):
    """x_ncl: (B, C_in, T) float32 -> (B, OUT_CHANNELS*GROUPS, T)."""
    B, Cin, T = x_ncl.shape
    n = B * T
    matmul_flops = 2 * n * (HG * Cin + 2 * LAYERS * HG * HG + OG * HG)
    bn_flops = 10 * n * HG * (2 * LAYERS + 1)
    nbytes = 4 * (x_ncl.size + wstack.size + vstack.size + B * OG * T)
    cost = pl.CostEstimate(flops=matmul_flops + bn_flops,
                           transcendentals=n * HG * (2 * LAYERS + 1),
                           bytes_accessed=nbytes)

    return pl.pallas_call(
        predictor_kernel,
        out_shape=jax.ShapeDtypeStruct((B, OG, T), jnp.float32),
        in_specs=[_vmem_spec(), _vmem_spec(), _vmem_spec()],
        out_specs=_vmem_spec(),
        cost_estimate=cost,
    )(x_ncl, wstack, vstack)


# ---------------------------- parameter setup (glue) ------------------------
def _block_diag(wg):
    """(G, Cout_g, Cin_g) grouped 1x1-conv weight -> dense (G*Cout_g, G*Cin_g)."""
    G, Co, Ci = wg.shape
    W = jnp.zeros((G * Co, G * Ci), wg.dtype)
    for g in range(G):
        W = W.at[g * Co:(g + 1) * Co, g * Ci:(g + 1) * Ci].set(wg[g])
    return W


def init_params(key):
    ks = jax.random.split(key, 10)
    f32 = jnp.float32

    # start conv: (HG, Cin)
    w0 = 0.3 * jax.random.normal(ks[0], (HG, IN_CHANNELS), f32)
    b0 = 0.1 * jax.random.normal(ks[1], (HG,), f32)
    g0 = 1.0 + 0.1 * jax.random.normal(ks[2], (HG,), f32)
    bt0 = 0.1 * jax.random.normal(ks[3], (HG,), f32)

    # residual grouped convs: (layers, 2, G, HIDDEN, HIDDEN)
    wres_g = 0.3 * jax.random.normal(ks[4], (LAYERS, 2, GROUPS, HIDDEN, HIDDEN), f32)
    bres = 0.1 * jax.random.normal(ks[5], (LAYERS, 2, HG), f32)
    gres = 1.0 + 0.1 * jax.random.normal(ks[6], (LAYERS, 2, HG), f32)
    btres = 0.1 * jax.random.normal(ks[7], (LAYERS, 2, HG), f32)

    # end grouped conv: (G, OUT_CHANNELS, HIDDEN)
    wend_g = 0.3 * jax.random.normal(ks[8], (GROUPS, OUT_CHANNELS, HIDDEN), f32)
    bend = 0.1 * jax.random.normal(ks[9], (OG,), f32)

    # dense (block-diagonal) PyTorch-layout weights (Cout, Cin)
    wres = jnp.stack([jnp.stack([_block_diag(wres_g[l, j]) for j in range(2)])
                      for l in range(LAYERS)])                      # (L,2,HG,HG)
    wend = _block_diag(wend_g)                                      # (OG, HG)

    torch_like = dict(w0=w0, b0=b0, g0=g0, bt0=bt0,
                      wres=wres, bres=bres, gres=gres, btres=btres,
                      wend=wend, bend=bend)

    # --- packed kernel operands: exactly two parameter arrays ---------------
    # wstack[0]            : start conv, (HG, Cin) in the first Cin columns
    # wstack[1 + 2l + j]   : residual conv (l, j), dense block-diagonal
    # wstack[NUM_W - 1]    : end conv, (OG, HG) in the first OG rows
    wstack = jnp.zeros((NUM_W, HG, HG), f32)
    wstack = wstack.at[0, :, :IN_CHANNELS].set(w0)
    for l in range(LAYERS):
        for j in range(2):
            wstack = wstack.at[1 + 2 * l + j].set(wres[l, j])
    wstack = wstack.at[NUM_W - 1, :OG, :].set(wend)

    # vstack columns: [b0, g0, bt0, (bres,gres,btres) x (L*2), bend(pad)]
    vstack = jnp.zeros((HG, NUM_V), f32)
    vstack = vstack.at[:, 0].set(b0)
    vstack = vstack.at[:, 1].set(g0)
    vstack = vstack.at[:, 2].set(bt0)
    for l in range(LAYERS):
        for j in range(2):
            base = 3 + 3 * (2 * l + j)
            vstack = vstack.at[:, base].set(bres[l, j])
            vstack = vstack.at[:, base + 1].set(gres[l, j])
            vstack = vstack.at[:, base + 2].set(btres[l, j])
    vstack = vstack.at[:OG, NUM_V - 1].set(bend)

    return torch_like, (wstack, vstack)


# ---------------------------- pure-JAX reference ----------------------------
def reference_forward(x, p):
    """Mirrors the PyTorch forward on NCL tensors (training-mode BatchNorm)."""
    def conv1x1(x, W, b):                 # W: (Cout, Cin)
        return jnp.einsum("oc,bct->bot", W, x) + b[None, :, None]

    def bn_tanh(y, gamma, beta):
        mean = jnp.mean(y, axis=(0, 2), keepdims=True)
        var = jnp.mean((y - mean) ** 2, axis=(0, 2), keepdims=True)
        return jnp.tanh((y - mean) / jnp.sqrt(var + BN_EPS)
                        * gamma[None, :, None] + beta[None, :, None])

    h = bn_tanh(conv1x1(x, p["w0"], p["b0"]), p["g0"], p["bt0"])
    for l in range(LAYERS):
        y = h
        for j in range(2):
            y = bn_tanh(conv1x1(y, p["wres"][l, j], p["bres"][l, j]),
                        p["gres"][l, j], p["btres"][l, j])
        h = y + h
    return conv1x1(h, p["wend"], p["bend"])


# ----------------------------------- main ------------------------------------
if __name__ == "__main__":
    key = jax.random.PRNGKey(0)
    k_x, k_p = jax.random.split(key)

    x = jax.random.normal(k_x, (BATCH, IN_CHANNELS, SEQ), jnp.float32)
    torch_like, (wstack, vstack) = init_params(k_p)

    out = predictor_forward(x, wstack, vstack)
    out = jax.block_until_ready(out)

    ref = reference_forward(x, torch_like)
    assert out.shape == (BATCH, OG, SEQ), out.shape
    assert bool(jnp.all(jnp.isfinite(out)))
    assert jnp.allclose(out, ref, atol=1e-3, rtol=1e-3), \
        float(jnp.max(jnp.abs(out - ref)))

    print("KERNEL_OK")
</pallas_src>

<mosaic_0001>
module attributes {stable_mosaic.version = 11 : i64} {
  func.func @predictor_kernel(%arg0: memref<2x4x16xf32, #tpu.memory_space<vmem>>, %arg1: memref<6x16x16xf32, #tpu.memory_space<vmem>>, %arg2: memref<16x16xf32, #tpu.memory_space<vmem>>, %arg3: memref<2x8x16xf32, #tpu.memory_space<vmem>>) attributes {dimension_semantics = [], scalar_prefetch = 0 : i64, scratch_operands = 0 : i64, tpu.core_type = #tpu.core_type<tc>} {
    %c0 = arith.constant 0 : index
    %c0_0 = arith.constant 0 : index
    %c0_1 = arith.constant 0 : index
    %0 = vector.load %arg0[%c0, %c0_0, %c0_1] : memref<2x4x16xf32, #tpu.memory_space<vmem>>, vector<1x4x16xf32>
    %1 = vector.shape_cast %0 : vector<1x4x16xf32> to vector<4x16xf32>
    %c1 = arith.constant 1 : index
    %c0_2 = arith.constant 0 : index
    %c0_3 = arith.constant 0 : index
    %2 = vector.load %arg0[%c1, %c0_2, %c0_3] : memref<2x4x16xf32, #tpu.memory_space<vmem>>, vector<1x4x16xf32>
    %3 = vector.shape_cast %2 : vector<1x4x16xf32> to vector<4x16xf32>
    %4 = tpu.concatenate %1, %3 in 1 : vector<4x16xf32>, vector<4x16xf32> -> vector<4x32xf32>
    %c0_4 = arith.constant 0 : index
    %c0_5 = arith.constant 0 : index
    %5 = vector.load %arg2[%c0_4, %c0_5] : memref<16x16xf32, #tpu.memory_space<vmem>>, vector<16x16xf32>
    %c0_6 = arith.constant 0 : index
    %c0_7 = arith.constant 0 : index
    %c0_8 = arith.constant 0 : index
    %6 = vector.load %arg1[%c0_6, %c0_7, %c0_8] : memref<6x16x16xf32, #tpu.memory_space<vmem>>, vector<1x16x16xf32>
    %7 = vector.shape_cast %6 : vector<1x16x16xf32> to vector<16x16xf32>
    %8 = vector.extract_strided_slice %7 {offsets = [0, 0], sizes = [16, 4], strides = [1, 1]} : vector<16x16xf32> to vector<16x4xf32>
    %cst = arith.constant dense<0.000000e+00> : vector<16x32xf32>
    %9 = tpu.matmul %8, %4, %cst {dimension_numbers = #tpu.dot_dimension_numbers<[1], [0], [0], [1], [0, 0, 1, 1], [], []>} : vector<16x4xf32>, vector<4x32xf32>, vector<16x32xf32> -> vector<16x32xf32>
    %10 = vector.extract_strided_slice %5 {offsets = [0, 0], sizes = [16, 1], strides = [1, 1]} : vector<16x16xf32> to vector<16x1xf32>
    %11 = vector.broadcast %10 : vector<16x1xf32> to vector<16x32xf32>
    %12 = arith.addf %9, %11 : vector<16x32xf32>
    %cst_9 = arith.constant dense<0.000000e+00> : vector<16xf32>
    %13 = vector.multi_reduction <add>, %12, %cst_9 [1] : vector<16x32xf32> to vector<16xf32>
    %14 = vector.shape_cast %13 : vector<16xf32> to vector<16x1xf32>
    %15 = arith.mulf %12, %12 : vector<16x32xf32>
    %cst_10 = arith.constant dense<0.000000e+00> : vector<16xf32>
    %16 = vector.multi_reduction <add>, %15, %cst_10 [1] : vector<16x32xf32> to vector<16xf32>
    %17 = vector.shape_cast %16 : vector<16xf32> to vector<16x1xf32>
    %cst_11 = arith.constant 3.125000e-02 : f32
    %18 = vector.broadcast %cst_11 : f32 to vector<16x1xf32>
    %19 = arith.mulf %14, %18 : vector<16x1xf32>
    %cst_12 = arith.constant 3.125000e-02 : f32
    %20 = vector.broadcast %cst_12 : f32 to vector<16x1xf32>
    %21 = arith.mulf %17, %20 : vector<16x1xf32>
    %22 = arith.mulf %19, %19 : vector<16x1xf32>
    %23 = arith.subf %21, %22 : vector<16x1xf32>
    %24 = vector.broadcast %19 : vector<16x1xf32> to vector<16x32xf32>
    %25 = arith.subf %12, %24 : vector<16x32xf32>
    %cst_13 = arith.constant 9.99999974E-6 : f32
    %26 = vector.broadcast %cst_13 : f32 to vector<16x1xf32>
    %27 = arith.addf %23, %26 : vector<16x1xf32>
    %28 = math.rsqrt %27 : vector<16x1xf32>
    %29 = vector.broadcast %28 : vector<16x1xf32> to vector<16x32xf32>
    %30 = arith.mulf %25, %29 : vector<16x32xf32>
    %31 = vector.extract_strided_slice %5 {offsets = [0, 1], sizes = [16, 1], strides = [1, 1]} : vector<16x16xf32> to vector<16x1xf32>
    %32 = vector.broadcast %31 : vector<16x1xf32> to vector<16x32xf32>
    %33 = arith.mulf %30, %32 : vector<16x32xf32>
    %34 = vector.extract_strided_slice %5 {offsets = [0, 2], sizes = [16, 1], strides = [1, 1]} : vector<16x16xf32> to vector<16x1xf32>
    %35 = vector.broadcast %34 : vector<16x1xf32> to vector<16x32xf32>
    %36 = arith.addf %33, %35 : vector<16x32xf32>
    %37 = math.tanh %36 : vector<16x32xf32>
    %c1_14 = arith.constant 1 : index
    %c0_15 = arith.constant 0 : index
    %c0_16 = arith.constant 0 : index
    %38 = vector.load %arg1[%c1_14, %c0_15, %c0_16] : memref<6x16x16xf32, #tpu.memory_space<vmem>>, vector<1x16x16xf32>
    %39 = vector.shape_cast %38 : vector<1x16x16xf32> to vector<16x16xf32>
    %cst_17 = arith.constant dense<0.000000e+00> : vector<16x32xf32>
    %40 = tpu.matmul %39, %37, %cst_17 {dimension_numbers = #tpu.dot_dimension_numbers<[1], [0], [0], [1], [0, 0, 1, 1], [], []>} : vector<16x16xf32>, vector<16x32xf32>, vector<16x32xf32> -> vector<16x32xf32>
    %41 = vector.extract_strided_slice %5 {offsets = [0, 3], sizes = [16, 1], strides = [1, 1]} : vector<16x16xf32> to vector<16x1xf32>
    %42 = vector.broadcast %41 : vector<16x1xf32> to vector<16x32xf32>
    %43 = arith.addf %40, %42 : vector<16x32xf32>
    %cst_18 = arith.constant dense<0.000000e+00> : vector<16xf32>
    %44 = vector.multi_reduction <add>, %43, %cst_18 [1] : vector<16x32xf32> to vector<16xf32>
    %45 = vector.shape_cast %44 : vector<16xf32> to vector<16x1xf32>
    %46 = arith.mulf %43, %43 : vector<16x32xf32>
    %cst_19 = arith.constant dense<0.000000e+00> : vector<16xf32>
    %47 = vector.multi_reduction <add>, %46, %cst_19 [1] : vector<16x32xf32> to vector<16xf32>
    %48 = vector.shape_cast %47 : vector<16xf32> to vector<16x1xf32>
    %cst_20 = arith.constant 3.125000e-02 : f32
    %49 = vector.broadcast %cst_20 : f32 to vector<16x1xf32>
    %50 = arith.mulf %45, %49 : vector<16x1xf32>
    %cst_21 = arith.constant 3.125000e-02 : f32
    %51 = vector.broadcast %cst_21 : f32 to vector<16x1xf32>
    %52 = arith.mulf %48, %51 : vector<16x1xf32>
    %53 = arith.mulf %50, %50 : vector<16x1xf32>
    %54 = arith.subf %52, %53 : vector<16x1xf32>
    %55 = vector.broadcast %50 : vector<16x1xf32> to vector<16x32xf32>
    %56 = arith.subf %43, %55 : vector<16x32xf32>
    %cst_22 = arith.constant 9.99999974E-6 : f32
    %57 = vector.broadcast %cst_22 : f32 to vector<16x1xf32>
    %58 = arith.addf %54, %57 : vector<16x1xf32>
    %59 = math.rsqrt %58 : vector<16x1xf32>
    %60 = vector.broadcast %59 : vector<16x1xf32> to vector<16x32xf32>
    %61 = arith.mulf %56, %60 : vector<16x32xf32>
    %62 = vector.extract_strided_slice %5 {offsets = [0, 4], sizes = [16, 1], strides = [1, 1]} : vector<16x16xf32> to vector<16x1xf32>
    %63 = vector.broadcast %62 : vector<16x1xf32> to vector<16x32xf32>
    %64 = arith.mulf %61, %63 : vector<16x32xf32>
    %65 = vector.extract_strided_slice %5 {offsets = [0, 5], sizes = [16, 1], strides = [1, 1]} : vector<16x16xf32> to vector<16x1xf32>
    %66 = vector.broadcast %65 : vector<16x1xf32> to vector<16x32xf32>
    %67 = arith.addf %64, %66 : vector<16x32xf32>
    %68 = math.tanh %67 : vector<16x32xf32>
    %c2 = arith.constant 2 : index
    %c0_23 = arith.constant 0 : index
    %c0_24 = arith.constant 0 : index
    %69 = vector.load %arg1[%c2, %c0_23, %c0_24] : memref<6x16x16xf32, #tpu.memory_space<vmem>>, vector<1x16x16xf32>
    %70 = vector.shape_cast %69 : vector<1x16x16xf32> to vector<16x16xf32>
    %cst_25 = arith.constant dense<0.000000e+00> : vector<16x32xf32>
    %71 = tpu.matmul %70, %68, %cst_25 {dimension_numbers = #tpu.dot_dimension_numbers<[1], [0], [0], [1], [0, 0, 1, 1], [], []>} : vector<16x16xf32>, vector<16x32xf32>, vector<16x32xf32> -> vector<16x32xf32>
    %72 = vector.extract_strided_slice %5 {offsets = [0, 6], sizes = [16, 1], strides = [1, 1]} : vector<16x16xf32> to vector<16x1xf32>
    %73 = vector.broadcast %72 : vector<16x1xf32> to vector<16x32xf32>
    %74 = arith.addf %71, %73 : vector<16x32xf32>
    %cst_26 = arith.constant dense<0.000000e+00> : vector<16xf32>
    %75 = vector.multi_reduction <add>, %74, %cst_26 [1] : vector<16x32xf32> to vector<16xf32>
    %76 = vector.shape_cast %75 : vector<16xf32> to vector<16x1xf32>
    %77 = arith.mulf %74, %74 : vector<16x32xf32>
    %cst_27 = arith.constant dense<0.000000e+00> : vector<16xf32>
    %78 = vector.multi_reduction <add>, %77, %cst_27 [1] : vector<16x32xf32> to vector<16xf32>
    %79 = vector.shape_cast %78 : vector<16xf32> to vector<16x1xf32>
    %cst_28 = arith.constant 3.125000e-02 : f32
    %80 = vector.broadcast %cst_28 : f32 to vector<16x1xf32>
    %81 = arith.mulf %76, %80 : vector<16x1xf32>
    %cst_29 = arith.constant 3.125000e-02 : f32
    %82 = vector.broadcast %cst_29 : f32 to vector<16x1xf32>
    %83 = arith.mulf %79, %82 : vector<16x1xf32>
    %84 = arith.mulf %81, %81 : vector<16x1xf32>
    %85 = arith.subf %83, %84 : vector<16x1xf32>
    %86 = vector.broadcast %81 : vector<16x1xf32> to vector<16x32xf32>
    %87 = arith.subf %74, %86 : vector<16x32xf32>
    %cst_30 = arith.constant 9.99999974E-6 : f32
    %88 = vector.broadcast %cst_30 : f32 to vector<16x1xf32>
    %89 = arith.addf %85, %88 : vector<16x1xf32>
    %90 = math.rsqrt %89 : vector<16x1xf32>
    %91 = vector.broadcast %90 : vector<16x1xf32> to vector<16x32xf32>
    %92 = arith.mulf %87, %91 : vector<16x32xf32>
    %93 = vector.extract_strided_slice %5 {offsets = [0, 7], sizes = [16, 1], strides = [1, 1]} : vector<16x16xf32> to vector<16x1xf32>
    %94 = vector.broadcast %93 : vector<16x1xf32> to vector<16x32xf32>
    %95 = arith.mulf %92, %94 : vector<16x32xf32>
    %96 = vector.extract_strided_slice %5 {offsets = [0, 8], sizes = [16, 1], strides = [1, 1]} : vector<16x16xf32> to vector<16x1xf32>
    %97 = vector.broadcast %96 : vector<16x1xf32> to vector<16x32xf32>
    %98 = arith.addf %95, %97 : vector<16x32xf32>
    %99 = math.tanh %98 : vector<16x32xf32>
    %100 = arith.addf %99, %37 : vector<16x32xf32>
    %c3 = arith.constant 3 : index
    %c0_31 = arith.constant 0 : index
    %c0_32 = arith.constant 0 : index
    %101 = vector.load %arg1[%c3, %c0_31, %c0_32] : memref<6x16x16xf32, #tpu.memory_space<vmem>>, vector<1x16x16xf32>
    %102 = vector.shape_cast %101 : vector<1x16x16xf32> to vector<16x16xf32>
    %cst_33 = arith.constant dense<0.000000e+00> : vector<16x32xf32>
    %103 = tpu.matmul %102, %100, %cst_33 {dimension_numbers = #tpu.dot_dimension_numbers<[1], [0], [0], [1], [0, 0, 1, 1], [], []>} : vector<16x16xf32>, vector<16x32xf32>, vector<16x32xf32> -> vector<16x32xf32>
    %104 = vector.extract_strided_slice %5 {offsets = [0, 9], sizes = [16, 1], strides = [1, 1]} : vector<16x16xf32> to vector<16x1xf32>
    %105 = vector.broadcast %104 : vector<16x1xf32> to vector<16x32xf32>
    %106 = arith.addf %103, %105 : vector<16x32xf32>
    %cst_34 = arith.constant dense<0.000000e+00> : vector<16xf32>
    %107 = vector.multi_reduction <add>, %106, %cst_34 [1] : vector<16x32xf32> to vector<16xf32>
    %108 = vector.shape_cast %107 : vector<16xf32> to vector<16x1xf32>
    %109 = arith.mulf %106, %106 : vector<16x32xf32>
    %cst_35 = arith.constant dense<0.000000e+00> : vector<16xf32>
    %110 = vector.multi_reduction <add>, %109, %cst_35 [1] : vector<16x32xf32> to vector<16xf32>
    %111 = vector.shape_cast %110 : vector<16xf32> to vector<16x1xf32>
    %cst_36 = arith.constant 3.125000e-02 : f32
    %112 = vector.broadcast %cst_36 : f32 to vector<16x1xf32>
    %113 = arith.mulf %108, %112 : vector<16x1xf32>
    %cst_37 = arith.constant 3.125000e-02 : f32
    %114 = vector.broadcast %cst_37 : f32 to vector<16x1xf32>
    %115 = arith.mulf %111, %114 : vector<16x1xf32>
    %116 = arith.mulf %113, %113 : vector<16x1xf32>
    %117 = arith.subf %115, %116 : vector<16x1xf32>
    %118 = vector.broadcast %113 : vector<16x1xf32> to vector<16x32xf32>
    %119 = arith.subf %106, %118 : vector<16x32xf32>
    %cst_38 = arith.constant 9.99999974E-6 : f32
    %120 = vector.broadcast %cst_38 : f32 to vector<16x1xf32>
    %121 = arith.addf %117, %120 : vector<16x1xf32>
    %122 = math.rsqrt %121 : vector<16x1xf32>
    %123 = vector.broadcast %122 : vector<16x1xf32> to vector<16x32xf32>
    %124 = arith.mulf %119, %123 : vector<16x32xf32>
    %125 = vector.extract_strided_slice %5 {offsets = [0, 10], sizes = [16, 1], strides = [1, 1]} : vector<16x16xf32> to vector<16x1xf32>
    %126 = vector.broadcast %125 : vector<16x1xf32> to vector<16x32xf32>
    %127 = arith.mulf %124, %126 : vector<16x32xf32>
    %128 = vector.extract_strided_slice %5 {offsets = [0, 11], sizes = [16, 1], strides = [1, 1]} : vector<16x16xf32> to vector<16x1xf32>
    %129 = vector.broadcast %128 : vector<16x1xf32> to vector<16x32xf32>
    %130 = arith.addf %127, %129 : vector<16x32xf32>
    %131 = math.tanh %130 : vector<16x32xf32>
    %c4 = arith.constant 4 : index
    %c0_39 = arith.constant 0 : index
    %c0_40 = arith.constant 0 : index
    %132 = vector.load %arg1[%c4, %c0_39, %c0_40] : memref<6x16x16xf32, #tpu.memory_space<vmem>>, vector<1x16x16xf32>
    %133 = vector.shape_cast %132 : vector<1x16x16xf32> to vector<16x16xf32>
    %cst_41 = arith.constant dense<0.000000e+00> : vector<16x32xf32>
    %134 = tpu.matmul %133, %131, %cst_41 {dimension_numbers = #tpu.dot_dimension_numbers<[1], [0], [0], [1], [0, 0, 1, 1], [], []>} : vector<16x16xf32>, vector<16x32xf32>, vector<16x32xf32> -> vector<16x32xf32>
    %135 = vector.extract_strided_slice %5 {offsets = [0, 12], sizes = [16, 1], strides = [1, 1]} : vector<16x16xf32> to vector<16x1xf32>
    %136 = vector.broadcast %135 : vector<16x1xf32> to vector<16x32xf32>
    %137 = arith.addf %134, %136 : vector<16x32xf32>
    %cst_42 = arith.constant dense<0.000000e+00> : vector<16xf32>
    %138 = vector.multi_reduction <add>, %137, %cst_42 [1] : vector<16x32xf32> to vector<16xf32>
    %139 = vector.shape_cast %138 : vector<16xf32> to vector<16x1xf32>
    %140 = arith.mulf %137, %137 : vector<16x32xf32>
    %cst_43 = arith.constant dense<0.000000e+00> : vector<16xf32>
    %141 = vector.multi_reduction <add>, %140, %cst_43 [1] : vector<16x32xf32> to vector<16xf32>
    %142 = vector.shape_cast %141 : vector<16xf32> to vector<16x1xf32>
    %cst_44 = arith.constant 3.125000e-02 : f32
    %143 = vector.broadcast %cst_44 : f32 to vector<16x1xf32>
    %144 = arith.mulf %139, %143 : vector<16x1xf32>
    %cst_45 = arith.constant 3.125000e-02 : f32
    %145 = vector.broadcast %cst_45 : f32 to vector<16x1xf32>
    %146 = arith.mulf %142, %145 : vector<16x1xf32>
    %147 = arith.mulf %144, %144 : vector<16x1xf32>
    %148 = arith.subf %146, %147 : vector<16x1xf32>
    %149 = vector.broadcast %144 : vector<16x1xf32> to vector<16x32xf32>
    %150 = arith.subf %137, %149 : vector<16x32xf32>
    %cst_46 = arith.constant 9.99999974E-6 : f32
    %151 = vector.broadcast %cst_46 : f32 to vector<16x1xf32>
    %152 = arith.addf %148, %151 : vector<16x1xf32>
    %153 = math.rsqrt %152 : vector<16x1xf32>
    %154 = vector.broadcast %153 : vector<16x1xf32> to vector<16x32xf32>
    %155 = arith.mulf %150, %154 : vector<16x32xf32>
    %156 = vector.extract_strided_slice %5 {offsets = [0, 13], sizes = [16, 1], strides = [1, 1]} : vector<16x16xf32> to vector<16x1xf32>
    %157 = vector.broadcast %156 : vector<16x1xf32> to vector<16x32xf32>
    %158 = arith.mulf %155, %157 : vector<16x32xf32>
    %159 = vector.extract_strided_slice %5 {offsets = [0, 14], sizes = [16, 1], strides = [1, 1]} : vector<16x16xf32> to vector<16x1xf32>
    %160 = vector.broadcast %159 : vector<16x1xf32> to vector<16x32xf32>
    %161 = arith.addf %158, %160 : vector<16x32xf32>
    %162 = math.tanh %161 : vector<16x32xf32>
    %163 = arith.addf %162, %100 : vector<16x32xf32>
    %c5 = arith.constant 5 : index
    %c0_47 = arith.constant 0 : index
    %c0_48 = arith.constant 0 : index
    %164 = vector.load %arg1[%c5, %c0_47, %c0_48] : memref<6x16x16xf32, #tpu.memory_space<vmem>>, vector<1x16x16xf32>
    %165 = vector.shape_cast %164 : vector<1x16x16xf32> to vector<16x16xf32>
    %166 = vector.extract_strided_slice %165 {offsets = [0, 0], sizes = [8, 16], strides = [1, 1]} : vector<16x16xf32> to vector<8x16xf32>
    %cst_49 = arith.constant dense<0.000000e+00> : vector<8x32xf32>
    %167 = tpu.matmul %166, %163, %cst_49 {dimension_numbers = #tpu.dot_dimension_numbers<[1], [0], [0], [1], [0, 0, 1, 1], [], []>} : vector<8x16xf32>, vector<16x32xf32>, vector<8x32xf32> -> vector<8x32xf32>
    %168 = vector.extract_strided_slice %5 {offsets = [0, 15], sizes = [16, 1], strides = [1, 1]} : vector<16x16xf32> to vector<16x1xf32>
    %169 = vector.extract_strided_slice %168 {offsets = [0, 0], sizes = [8, 1], strides = [1, 1]} : vector<16x1xf32> to vector<8x1xf32>
    %170 = vector.broadcast %169 : vector<8x1xf32> to vector<8x32xf32>
    %171 = arith.addf %167, %170 : vector<8x32xf32>
    %172 = vector.extract_strided_slice %171 {offsets = [0, 0], sizes = [8, 16], strides = [1, 1]} : vector<8x32xf32> to vector<8x16xf32>
    %c0_50 = arith.constant 0 : index
    %c0_51 = arith.constant 0 : index
    %c0_52 = arith.constant 0 : index
    %173 = vector.load %arg3[%c0_50, %c0_51, %c0_52] : memref<2x8x16xf32, #tpu.memory_space<vmem>>, vector<1x8x16xf32>
    %174 = vector.shape_cast %173 : vector<1x8x16xf32> to vector<8x16xf32>
    %175 = vector.shape_cast %172 : vector<8x16xf32> to vector<1x8x16xf32>
    tpu.vector_store %arg3[%c0_50, %c0_51, %c0_52], %175 {strides = array<i32>} : memref<2x8x16xf32, #tpu.memory_space<vmem>>, vector<1x8x16xf32>,
    %176 = vector.extract_strided_slice %171 {offsets = [0, 16], sizes = [8, 16], strides = [1, 1]} : vector<8x32xf32> to vector<8x16xf32>
    %c1_53 = arith.constant 1 : index
    %c0_54 = arith.constant 0 : index
    %c0_55 = arith.constant 0 : index
    %177 = vector.load %arg3[%c1_53, %c0_54, %c0_55] : memref<2x8x16xf32, #tpu.memory_space<vmem>>, vector<1x8x16xf32>
    %178 = vector.shape_cast %177 : vector<1x8x16xf32> to vector<8x16xf32>
    %179 = vector.shape_cast %176 : vector<8x16xf32> to vector<1x8x16xf32>
    tpu.vector_store %arg3[%c1_53, %c0_54, %c0_55], %179 {strides = array<i32>} : memref<2x8x16xf32, #tpu.memory_space<vmem>>, vector<1x8x16xf32>,
    return
  }
}

</mosaic_0001>

<bundles_post_ra>
// kernel: predictor_forward.1
= control target key start
LH: loop header
LB: loop body
LE: loop exit
PB: predicated region body
PF: predicated region fallthrough
CT: control target
= control target key end

     0   :  { %8 = vsyncpa [#allocation3], 0  ;;  %s1311_s0 = inlined_call_operand.hbm [shape: f32[2,4,16], index: 0, kind: input, shape index: {}]   ;;  %s1312_s1 = inlined_call_operand.hbm [shape: f32[6,16,16], index: 1, kind: input, shape index: {}]   ;;  %s1313_s2 = inlined_call_operand.hbm [shape: f32[16,16], index: 2, kind: input, shape index: {}]   ;;  %s1314_s3 = inlined_call_operand.hbm [shape: f32[2,8,16], index: 3, kind: output, shape index: {}]  }
   0x1   :  { %9 = vsyncpa [#allocation6], 0 }
   0x2   :  { %10 = vsyncpa [#allocation4], 0  ;;  %s1153_s12 = smov [#allocation5]  }
   0x3   :  { %s28_s13 = sshll.u32 %s1153_s12, 4  ;;  %s29_s13 = int_to_ptr.vmem [resolvable:$true] %s28_s13 }
   0x4   :  { %s1075_s14 = scalar_lea.vmem %s29_s13, 1536  ;;  %p1080_p1 = scmp.lt.s32.totalorder %s29_s13, %s29_s13 }
   0x5   :  { %p1076_p0 = scmp.ne.s32.totalorder %s29_s13, %s1075_s14  ;;  %p1081_p2 = scmp.lt.s32.totalorder %s1075_s14, %s1075_s14 }
   0x7   :  { %p1082_p3 = por %p1081_p2, %p1080_p1 }
   0x9   :  { %p1083_p4 = pnand %p1082_p3, %p1076_p0 }
   0xb   :  { %1086 = shalt.err (!%p1083_p4)
}
   0xc   :  { %s1154_s15 = smov 128   ;;  %s1155_s16 = smov 8  }
   0xd   :  { %34 = dma.hbm_to_vmem [thread:$0]  %s1312_s1, 1536, %s29_s13, [#allocation6], %s1154_s15, %s1154_s15, %s1155_s16  }
   0xe   :  { %s1156_s19 = smov [#allocation2]  }
   0xf   :  { %s16_s20 = sshll.u32 %s1156_s19, 4  ;;  %s17_s20 = int_to_ptr.vmem [resolvable:$true] %s16_s20 }
  0x10   :  { %s1095_s21 = scalar_lea.vmem %s17_s20, 128  ;;  %p1100_p6 = scmp.lt.s32.totalorder %s17_s20, %s17_s20 }
  0x11   :  { %p1096_p5 = scmp.ne.s32.totalorder %s17_s20, %s1095_s21  ;;  %p1101_p7 = scmp.lt.s32.totalorder %s1095_s21, %s1095_s21 }
  0x13   :  { %p1102_p8 = por %p1101_p7, %p1100_p6 }
  0x15   :  { %p1103_p9 = pnand %p1102_p8, %p1096_p5 }
  0x17   :  { %1106 = shalt.err (!%p1103_p9)
}
  0x18   :  { %s1157_s22 = smov 64   ;;  %s1158_s23 = smov 4  }
  0x19   :  { %22 = dma.hbm_to_vmem [thread:$0]  %s1311_s0, 128, %s17_s20, [#allocation3], %s1157_s22, %s1157_s22, %s1158_s23  }
  0x1a   :  { %s1159_s26 = smov [#allocation7]  }
  0x1b   :  { %s40_s27 = sshll.u32 %s1159_s26, 4  ;;  %s41_s27 = int_to_ptr.vmem [resolvable:$true] %s40_s27 }
  0x1c   :  { %s1115_s1 = scalar_lea.vmem %s41_s27, 256  ;;  %p1120_p11 = scmp.lt.s32.totalorder %s41_s27, %s41_s27 }
  0x1d   :  { %p1116_p10 = scmp.ne.s32.totalorder %s41_s27, %s1115_s1  ;;  %p1121_p12 = scmp.lt.s32.totalorder %s1115_s1, %s1115_s1 }
  0x1f   :  { %p1122_p13 = por %p1121_p12, %p1120_p11 }
  0x21   :  { %p1123_p0 = pnand %p1122_p13, %p1116_p10 }
  0x23   :  { %1126 = shalt.err (!%p1123_p0)
}
  0x24   :  { %46 = dma.hbm_to_vmem [thread:$0]  %s1313_s2, 256, %s41_s27, [#allocation6], %s1154_s15, %s1154_s15, %s1155_s16  }
  0x25   :  { %1147 = dma.done.wait [#allocation3], 128  }
  0x26   :  { %1148 = vsyncadd [#allocation3], 4294967168 }
  0x27   :  { %1149 = dma.done.wait [#allocation6], 1792  }
  0x28   :  { %1150 = vsyncadd [#allocation6], 4294965504  ;;  %v1160_v0 = vmov 0   ;;  %vm79_vm0 = vcmask 31744   ;;  %v58_v1 = vld [vmem:[#allocation2 + $0x4] sm:$0xf] }
  0x29   :  { %1004 = vset.pattern.permute.xlu0 %v1160_v0  ;;  %1005 = vset.pattern.permute.xlu1 %v1160_v0  ;;  %v67_v2 = vld [vmem:[#allocation5] sm:$0xff]  ;;  %s1161_s0 = smov 16   ;;  %v1219_v4 = vld [vmem:[#allocation7 + $0x8] sm:$0xff]  ;;  %v1162_v5 = vmov 1   ;;  %v56_v6 = vld [vmem:[#allocation2] sm:$0xf] }
  0x2a   :  { %60 = vrot.lane.b32.xlu0 %v58_v1, %s1161_s0  ;;  %938 = vmatprep.mubr.msk.f32.mxu0 %vm79_vm0, %v67_v2  ;;  %v1217_v3 = vld [vmem:[#allocation7] sm:$0xff]  ;;  %vm63_vm1 = vcmask 130048   ;;  %vm86_vm2 = vcmask 1043456   ;;  %v68_v9 = vld [vmem:[#allocation5 + $0x8] sm:$0xff]  ;;  %v1163_v10 = vmov 2   ;;  %vm165_vm3 = vcmask 261120  }
  0x2b   :  { %71 = vperm.xlu1 %1005, %v1217_v3   ;;  %v219_v23 = vld [vmem:[#allocation5 + $0x10] sm:$0xff]  ;;  %v1164_v24 = vmov 3   ;;  %v1165_v25 = vmov 4   ;;  %v220_v56 = vld [vmem:[#allocation5 + $0x18] sm:$0xff]  ;;  %v1166_v57 = vmov 5   ;;  %vm1177_vm4 = vmmov 0  }
  0x2c   :  { %945 = vmatprep.mubr.msk.f32.mxu1 %vm63_vm1, %v219_v23  ;;  %s1179_s2 = smov 112   ;;  %s1180_s30 = smov [#allocation8]  }
  0x2d   :  { %s889_s4 = sshll.u32 %s1180_s30, 4  ;;  %s890_s4 = int_to_ptr.vmem [resolvable:$true] %s889_s4 }
  0x2e   :  { %76 = vperm.xlu0 %1004, %v1219_v4   ;;  %s1127_s5 = scalar_lea.vmem %s890_s4, 256  ;;  %p1132_p2 = scmp.lt.s32.totalorder %s890_s4, %s890_s4 }
  0x2f   :  { %1006 = vset.pattern.permute.xlu1 %v1162_v5  ;;  %p1128_p1 = scmp.ne.s32.totalorder %s890_s4, %s1127_s5  ;;  %p1133_p3 = scmp.lt.s32.totalorder %s1127_s5, %s1127_s5 }
  0x30   :  { %201 = vperm.xlu1 %1006, %v1219_v4  }
  0x31   :  { %p1134_p4 = por %p1133_p3, %p1132_p2 }
  0x32   :  { %1007 = vset.pattern.permute.xlu0 %v1162_v5 }
  0x33   :  { %p1135_p5 = pnand %p1134_p4, %p1128_p1 }
  0x34   :  { %1008 = vset.pattern.permute.xlu1 %v1163_v10 }
  0x9c   :  { %v61_v7 = vpop.permute.xlu0 %60 }
  0x9d   :  { %v64_v8 = vsel %vm63_vm1, %v56_v6, %v61_v7 }
  0x9e   :  { %936 = vmatprep.subr.msk.mxu0 %vm86_vm2, %v64_v8 }
  0x9f   :  { %937 = vmatpush3.msk.msra.mxu0 %vm86_vm2, %v64_v8  ;;  %v363_v8 = vld [vmem:[#allocation5 + $0x20] sm:$0xff] }
  0xa0   :  { %939 = vmatmul.mubr.msk.f32.vlgmr.msra.gmra.mxu0 %vm79_vm0, %v68_v9  ;;  %v1167_v9 = vmov 6  }
  0xa1   :  { %952 = vmatprep.mubr.msk.f32.mxu0 %vm63_vm1, %v363_v8 }
  0xa6   :  { %v72_v13 = vpop.permute.xlu1 %71 }
  0xa9   :  { %v77_v11 = vpop.permute.xlu0 %76 }
  0xab   :  { %v202_v26 = vpop.permute.xlu1 %201 }
 0x160   :  { %v940_v12 = vpop.f32.mrf.mxu0 }
 0x161   :  { %v162_v14 = vadd.f32 %v940_v12, %v77_v11 }
 0x162   :  { %v156_v15 = vpop.f32.mrf.mxu0 }
 0x163   :  { %v157_v16 = vadd.f32 %v156_v15, %v72_v13  ;;  %v169_v17 = vsel %vm165_vm3, %v162_v14, 0.0  ;;  %v173_v18 = vmul.f32 %v162_v14, %v162_v14 }
 0x164   :  { %170 = vadd.xlane.f32.xlu1 %v169_v17 }
 0x165   :  { %v166_v19 = vsel %vm165_vm3, %v157_v16, 0.0  ;;  %v172_v20 = vmul.f32 %v157_v16, %v157_v16  ;;  %v177_v21 = vsel %vm165_vm3, %v173_v18, 0.0 }
 0x166   :  { %167 = vadd.xlane.f32.xlu0 %v166_v19 }
 0x167   :  { %v174_v22 = vsel %vm165_vm3, %v172_v20, 0.0 }
 0x168   :  { %178 = vadd.xlane.f32.xlu1 %v177_v21 }
 0x16a   :  { %175 = vadd.xlane.f32.xlu0 %v174_v22 }
 0x179   :  { %211 = vperm.xlu1 %1008, %v1219_v4  }
 0x17d   :  { %207 = vperm.xlu1 %1008, %v1217_v3  }
 0x180   :  { %197 = vperm.xlu0 %1007, %v1217_v3  }
 0x181   :  { %1009 = vset.pattern.permute.xlu1 %v1164_v24 }
 0x182   :  { %226 = vperm.xlu1 %1009, %v1219_v4  }
 0x184   :  { %1011 = vset.pattern.permute.xlu0 %v1165_v25 }
 0x186   :  { %222 = vperm.xlu1 %1009, %v1217_v3  }
 0x18a   :  { %1010 = vset.pattern.permute.xlu1 %v1165_v25 }
 0x18b   :  { %345 = vperm.xlu1 %1010, %v1219_v4  }
 0x18f   :  { %1012 = vset.pattern.permute.xlu1 %v1166_v57  ;;  %v509_v57 = vld [vmem:[#allocation5 + $0x30] sm:$0xff] }
 0x1ed   :  { %v171_v27 = vpop.xlane.xlu1 %170 }
 0x1ee   :  { %v181_v28 = vmul.f32 0.03125, %v171_v27 }
 0x1ef   :  { %v168_v29 = vpop.xlane.xlu0 %167 }
 0x1f0   :  { %v180_v30 = vmul.f32 0.03125, %v168_v29  ;;  %v185_v32 = vmul.f32 %v181_v28, %v181_v28  ;;  %v189_v41 = vsub.f32 %v162_v14, %v181_v28 }
 0x1f1   :  { %v179_v31 = vpop.xlane.xlu1 %178 }
 0x1f2   :  { %v183_v33 = vmul.f32 0.03125, %v179_v31  ;;  %v184_v35 = vmul.f32 %v180_v30, %v180_v30  ;;  %v188_v44 = vsub.f32 %v157_v16, %v180_v30 }
 0x1f3   :  { %v176_v34 = vpop.xlane.xlu0 %175 }
 0x1f4   :  { %v187_v36 = vsub.f32 %v183_v33, %v185_v32  ;;  %v182_v37 = vmul.f32 0.03125, %v176_v34 }
 0x1f5   :  { %v212_v43 = vpop.permute.xlu1 %211 }
 0x1f6   :  { %v191_v38 = vadd.f32 1e-05, %v187_v36  ;;  %v186_v39 = vsub.f32 %v182_v37, %v184_v35 }
 0x1f8   :  { %1027 = vrsqrt.f32 %v191_v38  ;;  %v190_v40 = vadd.f32 1e-05, %v186_v39 }
 0x1f9   :  { %v208_v52 = vpop.permute.xlu1 %207 }
 0x1fa   :  { %1029 = vrsqrt.f32 %v190_v40  ;;  %v364_v40 = vld [vmem:[#allocation5 + $0x28] sm:$0xff] }
 0x1fb   :  { %v198_v47 = vpop.permute.xlu0 %197 }
 0x1fd   :  { %v227_v58 = vpop.permute.xlu1 %226 }
 0x201   :  { %v223_v61 = vpop.permute.xlu1 %222 }
 0x205   :  { %v1028_v42 = vpop.eup %1027 }
 0x206   :  { %v195_v45 = vmul.f32 %v1028_v42, %v189_v41  ;;  %v346_v10 = vpop.permute.xlu1 %345  ;;  %v1168_v41 = vmov 7  }
 0x207   :  { %v1030_v46 = vpop.eup %1029 }
 0x208   :  { %v205_v48 = vmul.f32 %v202_v26, %v195_v45  ;;  %v194_v49 = vmul.f32 %v1030_v46, %v188_v44 }
 0x20a   :  { %v215_v50 = vadd.f32 %v212_v43, %v205_v48  ;;  %v204_v51 = vmul.f32 %v198_v47, %v194_v49 }
 0x20c   :  { %1031 = vtanh.f32 %v215_v50  ;;  %v214_v53 = vadd.f32 %v208_v52, %v204_v51  ;;  %v1169_v50 = vmov 8  }
 0x20e   :  { %1033 = vtanh.f32 %v214_v53 }
 0x219   :  { %v1237_v54 = vpop.eup %1031 }
 0x21a   :  { %941 = vmatprep.subr.mxu1 %v1237_v54 }
 0x21b   :  { %v1240_v55 = vpop.eup %1033  ;;  %942 = vmatpush3.msra.mxu1 %v1237_v54 }
 0x21c   :  { %943 = vmatprep.subr.mxu1 %v1240_v55 }
 0x21d   :  { %944 = vmatpush3.msra.mxu1 %v1240_v55 }
 0x21e   :  { %946 = vmatmul.mubr.msk.f32.vlgmr.msra.gmra.mxu1 %vm63_vm1, %v220_v56 }
 0x21f   :  { %959 = vmatprep.mubr.msk.f32.mxu1 %vm63_vm1, %v509_v57 }
 0x2de   :  { %v947_v59 = vpop.f32.mrf.mxu1 }
 0x2df   :  { %v307_v60 = vadd.f32 %v947_v59, %v227_v58  ;;  %v1170_v58 = vmov 9  }
 0x2e0   :  { %v301_v62 = vpop.f32.mrf.mxu1 }
 0x2e1   :  { %v302_v63 = vadd.f32 %v301_v62, %v223_v61  ;;  %v313_v0 = vsel %vm165_vm3, %v307_v60, 0.0  ;;  %v317_v2 = vmul.f32 %v307_v60, %v307_v60 }
 0x2e2   :  { %314 = vadd.xlane.f32.xlu1 %v313_v0 }
 0x2e3   :  { %v310_v1 = vsel %vm165_vm3, %v302_v63, 0.0  ;;  %v321_v5 = vsel %vm165_vm3, %v317_v2, 0.0  ;;  %v316_v6 = vmul.f32 %v302_v63, %v302_v63 }
 0x2e4   :  { %311 = vadd.xlane.f32.xlu0 %v310_v1 }
 0x2e5   :  { %v318_v7 = vsel %vm165_vm3, %v316_v6, 0.0 }
 0x2f3   :  { %355 = vperm.xlu1 %1012, %v1219_v4  }
 0x2fa   :  { %341 = vperm.xlu0 %1011, %v1217_v3  }
 0x2fe   :  { %1014 = vset.pattern.permute.xlu0 %v1168_v41 }
 0x317   :  { %322 = vadd.xlane.f32.xlu1 %v321_v5 }
 0x31b   :  { %319 = vadd.xlane.f32.xlu1 %v318_v7 }
 0x32c   :  { %351 = vperm.xlu1 %1012, %v1217_v3  }
 0x330   :  { %1013 = vset.pattern.permute.xlu1 %v1167_v9 }
 0x331   :  { %370 = vperm.xlu1 %1013, %v1219_v4  }
 0x335   :  { %366 = vperm.xlu1 %1013, %v1217_v3  }
 0x339   :  { %1015 = vset.pattern.permute.xlu1 %v1168_v41 }
 0x36b   :  { %v315_v11 = vpop.xlane.xlu1 %314 }
 0x36c   :  { %v325_v13 = vmul.f32 0.03125, %v315_v11 }
 0x36d   :  { %v312_v14 = vpop.xlane.xlu0 %311 }
 0x36e   :  { %v329_v16 = vmul.f32 %v325_v13, %v325_v13  ;;  %v324_v17 = vmul.f32 0.03125, %v312_v14  ;;  %v333_v26 = vsub.f32 %v307_v60, %v325_v13 }
 0x36f   :  { %v356_v12 = vpop.permute.xlu1 %355 }
 0x370   :  { %v328_v21 = vmul.f32 %v324_v17, %v324_v17  ;;  %v332_v29 = vsub.f32 %v302_v63, %v324_v17 }
 0x375   :  { %v342_v32 = vpop.permute.xlu0 %341 }
 0x3a0   :  { %v323_v15 = vpop.xlane.xlu1 %322 }
 0x3a1   :  { %v327_v18 = vmul.f32 0.03125, %v323_v15 }
 0x3a3   :  { %v331_v19 = vsub.f32 %v327_v18, %v329_v16 }
 0x3a4   :  { %v320_v20 = vpop.xlane.xlu1 %319 }
 0x3a5   :  { %v335_v22 = vadd.f32 1e-05, %v331_v19  ;;  %v326_v23 = vmul.f32 0.03125, %v320_v20 }
 0x3a7   :  { %1035 = vrsqrt.f32 %v335_v22  ;;  %v330_v24 = vsub.f32 %v326_v23, %v328_v21 }
 0x3a8   :  { %v352_v36 = vpop.permute.xlu1 %351 }
 0x3a9   :  { %v334_v25 = vadd.f32 1e-05, %v330_v24 }
 0x3ab   :  { %1037 = vrsqrt.f32 %v334_v25 }
 0x3ac   :  { %v371_v42 = vpop.permute.xlu1 %370 }
 0x3b0   :  { %v367_v45 = vpop.permute.xlu1 %366 }
 0x3b4   :  { %v1036_v27 = vpop.eup %1035 }
 0x3b5   :  { %v339_v28 = vmul.f32 %v1036_v27, %v333_v26 }
 0x3b7   :  { %v349_v30 = vmul.f32 %v346_v10, %v339_v28 }
 0x3b8   :  { %v1038_v31 = vpop.eup %1037 }
 0x3b9   :  { %v359_v33 = vadd.f32 %v356_v12, %v349_v30  ;;  %v338_v34 = vmul.f32 %v1038_v31, %v332_v29  ;;  %v510_v29 = vld [vmem:[#allocation5 + $0x38] sm:$0xff]  ;;  %v1171_v30 = vmov 10  }
 0x3bb   :  { %1039 = vtanh.f32 %v359_v33  ;;  %v348_v35 = vmul.f32 %v342_v32, %v338_v34 }
 0x3bd   :  { %v358_v37 = vadd.f32 %v352_v36, %v348_v35 }
 0x3bf   :  { %1041 = vtanh.f32 %v358_v37  ;;  %v1172_v37 = vmov 11  }
 0x3c8   :  { %v1040_v38 = vpop.eup %1039 }
 0x3c9   :  { %948 = vmatprep.subr.mxu0 %v1040_v38 }
 0x3ca   :  { %949 = vmatpush3.msra.mxu0 %v1040_v38 }
 0x3cc   :  { %v1042_v39 = vpop.eup %1041 }
 0x3cd   :  { %950 = vmatprep.subr.mxu0 %v1042_v39 }
 0x3ce   :  { %951 = vmatpush3.msra.mxu0 %v1042_v39 }
 0x3cf   :  { %953 = vmatmul.mubr.msk.f32.vlgmr.msra.gmra.mxu0 %vm63_vm1, %v364_v40 }
 0x48f   :  { %v954_v43 = vpop.f32.mrf.mxu0 }
 0x490   :  { %v451_v44 = vadd.f32 %v954_v43, %v371_v42  ;;  %v653_v42 = vld [vmem:[#allocation5 + $0x40] sm:$0xff]  ;;  %v1173_v43 = vmov 12  }
 0x491   :  { %v445_v46 = vpop.f32.mrf.mxu0  ;;  %966 = vmatprep.mubr.msk.f32.mxu0 %vm63_vm1, %v653_v42 }
 0x492   :  { %v446_v47 = vadd.f32 %v445_v46, %v367_v45  ;;  %v457_v48 = vsel %vm165_vm3, %v451_v44, 0.0  ;;  %v461_v51 = vmul.f32 %v451_v44, %v451_v44 }
 0x493   :  { %458 = vadd.xlane.f32.xlu1 %v457_v48 }
 0x494   :  { %v454_v49 = vsel %vm165_vm3, %v446_v47, 0.0  ;;  %v465_v52 = vsel %vm165_vm3, %v461_v51, 0.0  ;;  %v460_v53 = vmul.f32 %v446_v47, %v446_v47 }
 0x495   :  { %455 = vadd.xlane.f32.xlu0 %v454_v49 }
 0x496   :  { %v462_v56 = vsel %vm165_vm3, %v460_v53, 0.0 }
 0x4a4   :  { %485 = vperm.xlu1 %1015, %v1217_v3  }
 0x4a8   :  { %1016 = vset.pattern.permute.xlu1 %v1169_v50 }
 0x4a9   :  { %499 = vperm.xlu1 %1016, %v1219_v4  }
 0x4ab   :  { %489 = vperm.xlu0 %1014, %v1219_v4  }
 0x4af   :  { %1018 = vset.pattern.permute.xlu0 %v1171_v30 }
 0x4cd   :  { %466 = vadd.xlane.f32.xlu1 %v465_v52 }
 0x4d1   :  { %463 = vadd.xlane.f32.xlu1 %v462_v56 }
 0x4e2   :  { %495 = vperm.xlu1 %1016, %v1217_v3  }
 0x4e6   :  { %1017 = vset.pattern.permute.xlu1 %v1170_v58 }
 0x4e7   :  { %516 = vperm.xlu1 %1017, %v1219_v4  }
 0x4eb   :  { %512 = vperm.xlu1 %1017, %v1217_v3  }
 0x4ef   :  { %1019 = vset.pattern.permute.xlu1 %v1171_v30 }
 0x51c   :  { %v459_v59 = vpop.xlane.xlu1 %458 }
 0x51d   :  { %v469_v62 = vmul.f32 0.03125, %v459_v59 }
 0x51e   :  { %v456_v63 = vpop.xlane.xlu0 %455 }
 0x51f   :  { %v473_v1 = vmul.f32 %v469_v62, %v469_v62  ;;  %v468_v2 = vmul.f32 0.03125, %v456_v63  ;;  %v477_v13 = vsub.f32 %v451_v44, %v469_v62  ;;  %v1174_v44 = vmov 13  }
 0x520   :  { %v486_v60 = vpop.permute.xlu1 %485 }
 0x521   :  { %v472_v8 = vmul.f32 %v468_v2, %v468_v2  ;;  %v476_v17 = vsub.f32 %v446_v47, %v468_v2 }
 0x524   :  { %v500_v61 = vpop.permute.xlu1 %499 }
 0x526   :  { %v490_v15 = vpop.permute.xlu0 %489 }
 0x556   :  { %v467_v0 = vpop.xlane.xlu1 %466 }
 0x557   :  { %v471_v5 = vmul.f32 0.03125, %v467_v0 }
 0x559   :  { %v475_v6 = vsub.f32 %v471_v5, %v473_v1 }
 0x55a   :  { %v464_v7 = vpop.xlane.xlu1 %463 }
 0x55b   :  { %v479_v9 = vadd.f32 1e-05, %v475_v6  ;;  %v470_v10 = vmul.f32 0.03125, %v464_v7 }
 0x55d   :  { %1043 = vrsqrt.f32 %v479_v9  ;;  %v474_v11 = vsub.f32 %v470_v10, %v472_v8 }
 0x55e   :  { %v496_v23 = vpop.permute.xlu1 %495 }
 0x55f   :  { %v478_v12 = vadd.f32 1e-05, %v474_v11 }
 0x561   :  { %1045 = vrsqrt.f32 %v478_v12 }
 0x56a   :  { %v1044_v14 = vpop.eup %1043 }
 0x56b   :  { %v483_v16 = vmul.f32 %v1044_v14, %v477_v13 }
 0x56d   :  { %v493_v18 = vmul.f32 %v490_v15, %v483_v16  ;;  %v654_v15 = vld [vmem:[#allocation5 + $0x48] sm:$0xff]  ;;  %v1175_v16 = vmov 14  }
 0x56e   :  { %v1046_v19 = vpop.eup %1045 }
 0x56f   :  { %v482_v20 = vmul.f32 %v1046_v19, %v476_v17  ;;  %v503_v21 = vadd.f32 %v500_v61, %v493_v18 }
 0x571   :  { %v492_v22 = vmul.f32 %v486_v60, %v482_v20  ;;  %1047 = vtanh.f32 %v503_v21 }
 0x573   :  { %v502_v24 = vadd.f32 %v496_v23, %v492_v22 }
 0x575   :  { %1049 = vtanh.f32 %v502_v24 }
 0x57e   :  { %v1048_v25 = vpop.eup %1047 }
 0x57f   :  { %v1269_v26 = vadd.f32 %v1048_v25, %v1237_v54  ;;  %v517_v54 = vpop.permute.xlu1 %516 }
 0x581   :  { %955 = vmatprep.subr.mxu1 %v1269_v26 }
 0x582   :  { %v1050_v27 = vpop.eup %1049  ;;  %956 = vmatpush3.msra.mxu1 %v1269_v26 }
 0x583   :  { %v1274_v28 = vadd.f32 %v1050_v27, %v1240_v55  ;;  %v513_v33 = vpop.permute.xlu1 %512 }
 0x585   :  { %957 = vmatprep.subr.mxu1 %v1274_v28 }
 0x586   :  { %958 = vmatpush3.msra.mxu1 %v1274_v28 }
 0x587   :  { %960 = vmatmul.mubr.msk.f32.vlgmr.msra.gmra.mxu1 %vm63_vm1, %v510_v29 }
 0x647   :  { %v961_v31 = vpop.f32.mrf.mxu1 }
 0x648   :  { %v597_v32 = vadd.f32 %v961_v31, %v517_v54  ;;  %v1176_v54 = vmov 0.0   ;;  %v1178_v31 = vmov 15  }
 0x649   :  { %v591_v34 = vpop.f32.mrf.mxu1  ;;  %969 = vmatprep.subr.mxu1 %v1176_v54  ;;  %973 = vmatprep.mubr.msk.f32.mxu1 %vm1177_vm4, %v1176_v54 }
 0x64a   :  { %v592_v35 = vadd.f32 %v591_v34, %v513_v33  ;;  %v603_v36 = vsel %vm165_vm3, %v597_v32, 0.0  ;;  %v607_v38 = vmul.f32 %v597_v32, %v597_v32 }
 0x64b   :  { %604 = vadd.xlane.f32.xlu1 %v603_v36 }
 0x64c   :  { %v600_v55 = vsel %vm165_vm3, %v592_v35, 0.0  ;;  %v611_v39 = vsel %vm165_vm3, %v607_v38, 0.0  ;;  %v606_v40 = vmul.f32 %v592_v35, %v592_v35 }
 0x64d   :  { %601 = vadd.xlane.f32.xlu0 %v600_v55 }
 0x64e   :  { %v608_v41 = vsel %vm165_vm3, %v606_v40, 0.0 }
 0x65c   :  { %631 = vperm.xlu1 %1019, %v1217_v3  }
 0x660   :  { %1020 = vset.pattern.permute.xlu1 %v1172_v37 }
 0x661   :  { %645 = vperm.xlu1 %1020, %v1219_v4  }
 0x663   :  { %635 = vperm.xlu0 %1018, %v1219_v4  }
 0x667   :  { %1023 = vset.pattern.permute.xlu0 %v1174_v44 }
 0x685   :  { %612 = vadd.xlane.f32.xlu1 %v611_v39 }
 0x689   :  { %609 = vadd.xlane.f32.xlu1 %v608_v41 }
 0x69a   :  { %641 = vperm.xlu1 %1020, %v1217_v3  }
 0x69e   :  { %1021 = vset.pattern.permute.xlu1 %v1173_v43 }
 0x69f   :  { %660 = vperm.xlu1 %1021, %v1219_v4  }
 0x6a3   :  { %656 = vperm.xlu1 %1021, %v1217_v3  }
 0x6a7   :  { %1022 = vset.pattern.permute.xlu1 %v1174_v44 }
 0x6a8   :  { %779 = vperm.xlu1 %1022, %v1219_v4  }
 0x6ac   :  { %1024 = vset.pattern.permute.xlu1 %v1175_v16 }
 0x6d4   :  { %v605_v45 = vpop.xlane.xlu1 %604 }
 0x6d5   :  { %v615_v48 = vmul.f32 0.03125, %v605_v45 }
 0x6d6   :  { %v602_v49 = vpop.xlane.xlu0 %601 }
 0x6d7   :  { %v619_v51 = vmul.f32 %v615_v48, %v615_v48  ;;  %v614_v52 = vmul.f32 0.03125, %v602_v49  ;;  %v623_v63 = vsub.f32 %v597_v32, %v615_v48 }
 0x6d8   :  { %v632_v46 = vpop.permute.xlu1 %631 }
 0x6d9   :  { %v618_v58 = vmul.f32 %v614_v52, %v614_v52  ;;  %v622_v5 = vsub.f32 %v592_v35, %v614_v52 }
 0x6dc   :  { %v646_v47 = vpop.permute.xlu1 %645 }
 0x6de   :  { %v636_v1 = vpop.permute.xlu0 %635 }
 0x70e   :  { %v613_v50 = vpop.xlane.xlu1 %612 }
 0x70f   :  { %v617_v53 = vmul.f32 0.03125, %v613_v50 }
 0x711   :  { %v621_v56 = vsub.f32 %v617_v53, %v619_v51 }
 0x712   :  { %v610_v57 = vpop.xlane.xlu1 %609 }
 0x713   :  { %v625_v59 = vadd.f32 1e-05, %v621_v56  ;;  %v616_v60 = vmul.f32 0.03125, %v610_v57 }
 0x715   :  { %1051 = vrsqrt.f32 %v625_v59  ;;  %v620_v61 = vsub.f32 %v616_v60, %v618_v58 }
 0x716   :  { %v642_v11 = vpop.permute.xlu1 %641 }
 0x717   :  { %v624_v62 = vadd.f32 1e-05, %v620_v61 }
 0x719   :  { %1053 = vrsqrt.f32 %v624_v62 }
 0x71a   :  { %v661_v17 = vpop.permute.xlu1 %660 }
 0x71e   :  { %v657_v20 = vpop.permute.xlu1 %656 }
 0x722   :  { %v1052_v0 = vpop.eup %1051 }
 0x723   :  { %v629_v2 = vmul.f32 %v1052_v0, %v623_v63  ;;  %v780_v32 = vpop.permute.xlu1 %779  ;;  %v799_v63 = vld [vmem:[#allocation5 + $0x50] sm:$0xff] }
 0x725   :  { %v639_v6 = vmul.f32 %v636_v1, %v629_v2 }
 0x726   :  { %v1054_v7 = vpop.eup %1053 }
 0x727   :  { %v628_v8 = vmul.f32 %v1054_v7, %v622_v5  ;;  %v649_v9 = vadd.f32 %v646_v47, %v639_v6 }
 0x729   :  { %v638_v10 = vmul.f32 %v632_v46, %v628_v8  ;;  %1055 = vtanh.f32 %v649_v9 }
 0x72b   :  { %v648_v12 = vadd.f32 %v642_v11, %v638_v10 }
 0x72d   :  { %1057 = vtanh.f32 %v648_v12 }
 0x736   :  { %v1056_v13 = vpop.eup %1055 }
 0x737   :  { %962 = vmatprep.subr.mxu0 %v1056_v13 }
 0x738   :  { %963 = vmatpush3.msra.mxu0 %v1056_v13 }
 0x73a   :  { %v1058_v14 = vpop.eup %1057 }
 0x73b   :  { %964 = vmatprep.subr.mxu0 %v1058_v14 }
 0x73c   :  { %965 = vmatpush3.msra.mxu0 %v1058_v14 }
 0x73d   :  { %967 = vmatmul.mubr.msk.f32.vlgmr.msra.gmra.mxu0 %vm63_vm1, %v654_v15 }
 0x7fd   :  { %v968_v18 = vpop.f32.mrf.mxu0 }
 0x7fe   :  { %v741_v19 = vadd.f32 %v968_v18, %v661_v17 }
 0x7ff   :  { %v735_v21 = vpop.f32.mrf.mxu0 }
 0x800   :  { %v736_v22 = vadd.f32 %v735_v21, %v657_v20  ;;  %v747_v23 = vsel %vm165_vm3, %v741_v19, 0.0  ;;  %v751_v24 = vmul.f32 %v741_v19, %v741_v19 }
 0x801   :  { %748 = vadd.xlane.f32.xlu1 %v747_v23 }
 0x802   :  { %v744_v25 = vsel %vm165_vm3, %v736_v22, 0.0  ;;  %v750_v27 = vmul.f32 %v736_v22, %v736_v22  ;;  %v755_v29 = vsel %vm165_vm3, %v751_v24, 0.0 }
 0x803   :  { %745 = vadd.xlane.f32.xlu0 %v744_v25 }
 0x804   :  { %v752_v30 = vsel %vm165_vm3, %v750_v27, 0.0 }
 0x805   :  { %756 = vadd.xlane.f32.xlu1 %v755_v29 }
 0x807   :  { %753 = vadd.xlane.f32.xlu0 %v752_v30 }
 0x816   :  { %789 = vperm.xlu1 %1024, %v1219_v4  }
 0x81a   :  { %785 = vperm.xlu1 %1024, %v1217_v3  }
 0x81d   :  { %775 = vperm.xlu0 %1023, %v1217_v3  }
 0x81e   :  { %1025 = vset.pattern.permute.xlu1 %v1178_v31 }
 0x81f   :  { %801 = vperm.xlu1 %1025, %v1217_v3  }
 0x821   :  { %1026 = vset.pattern.permute.xlu0 %v1178_v31 }
 0x88a   :  { %v749_v33 = vpop.xlane.xlu1 %748 }
 0x88b   :  { %v759_v34 = vmul.f32 0.03125, %v749_v33 }
 0x88c   :  { %v746_v35 = vpop.xlane.xlu0 %745 }
 0x88d   :  { %v758_v36 = vmul.f32 0.03125, %v746_v35  ;;  %v763_v4 = vmul.f32 %v759_v34, %v759_v34  ;;  %v767_v45 = vsub.f32 %v741_v19, %v759_v34 }
 0x88e   :  { %v757_v55 = vpop.xlane.xlu1 %756 }
 0x88f   :  { %v761_v37 = vmul.f32 0.03125, %v757_v55  ;;  %v762_v39 = vmul.f32 %v758_v36, %v758_v36  ;;  %v766_v47 = vsub.f32 %v736_v22, %v758_v36 }
 0x890   :  { %v754_v38 = vpop.xlane.xlu0 %753 }
 0x891   :  { %v765_v40 = vsub.f32 %v761_v37, %v763_v4  ;;  %v760_v41 = vmul.f32 0.03125, %v754_v38 }
 0x892   :  { %v790_v3 = vpop.permute.xlu1 %789 }
 0x893   :  { %v769_v42 = vadd.f32 1e-05, %v765_v40  ;;  %v764_v43 = vsub.f32 %v760_v41, %v762_v39 }
 0x895   :  { %1059 = vrsqrt.f32 %v769_v42  ;;  %v768_v44 = vadd.f32 1e-05, %v764_v43 }
 0x896   :  { %v786_v57 = vpop.permute.xlu1 %785 }
 0x897   :  { %1061 = vrsqrt.f32 %v768_v44 }
 0x898   :  { %v776_v50 = vpop.permute.xlu0 %775 }
 0x89a   :  { %v802_v0 = vpop.permute.xlu1 %801 }
 0x8a2   :  { %v1060_v46 = vpop.eup %1059 }
 0x8a3   :  { %v773_v48 = vmul.f32 %v1060_v46, %v767_v45 }
 0x8a4   :  { %v1062_v49 = vpop.eup %1061 }
 0x8a5   :  { %v783_v51 = vmul.f32 %v780_v32, %v773_v48  ;;  %v772_v52 = vmul.f32 %v1062_v49, %v766_v47 }
 0x8a7   :  { %v793_v53 = vadd.f32 %v790_v3, %v783_v51  ;;  %v782_v56 = vmul.f32 %v776_v50, %v772_v52 }
 0x8a9   :  { %1063 = vtanh.f32 %v793_v53  ;;  %v792_v58 = vadd.f32 %v786_v57, %v782_v56 }
 0x8ab   :  { %1065 = vtanh.f32 %v792_v58 }
 0x8b6   :  { %v1064_v59 = vpop.eup %1063 }
 0x8b7   :  { %v797_v60 = vadd.f32 %v1064_v59, %v1269_v26 }
 0x8b8   :  { %v1066_v61 = vpop.eup %1065 }
 0x8b9   :  { %970 = vmatpush3.msra.mxu1 %v797_v60  ;;  %v796_v62 = vadd.f32 %v1066_v61, %v1274_v28 }
 0x8ba   :  { %971 = vmatprep.subr.mxu1 %v1176_v54 }
 0x8bb   :  { %972 = vmatpush3.msra.mxu1 %v796_v62 }
 0x8bc   :  { %974 = vmatmul.mubr.msk.f32.vlgmr.msra.gmra.mxu1 %vm63_vm1, %v799_v63 }
 0x97c   :  { %v873_v1 = vpop.f32.mrf.mxu1 }
 0x97d   :  { %v874_v2 = vadd.f32 %v873_v1, %v802_v0 }
 0x97e   :  { %v975_v5 = vpop.f32.mrf.mxu1 }
 0x97f   :  { %877 = vst.msk [vmem:[#allocation8] sm:$0xff] %vm63_vm1, %v874_v2  ;;  %879 = vrot.lane.b32.xlu1 %v874_v2, %s1179_s2 }
 0x9f1   :  { %v880_v26 = vpop.permute.xlu1 %879 }
 0x9f2   :  { %883 = vst.msk [vmem:[#allocation8 + $0x8] sm:$0xff] %vm63_vm1, %v880_v26 }
 0x9f3   :  { %1138 = shalt.err (!%p1135_p5)
}
 0x9f4   :  { %895 = dma.vmem_to_hbm [thread:$0]  %s890_s4, 256, %s1314_s3, [#allocation4], %s1154_s15, %s1154_s15, %s1155_s16  }
 0x9f5   :  { %1151 = dma.done.wait [#allocation4], 256  }
 0x9f6   :  { %1152 = vsyncadd [#allocation4], 4294967040 }
 0x9f7   :  { %899 = vsyncpa [#allocation3], 1 }
 0x9f8   :  { %900 = vsyncpa [#allocation6], 1 }
 0x9f9   :  { %901 = vsyncpa [#allocation4], 1 }

</bundles_post_ra>
